<compile_context>
chip_gen: v7x
topology: tpu7x:2x2x1
jax: 0.10.0
libtpu: 0.0.40
codegen_flags: <defaults>
</compile_context>

<pallas_src>
import functools

import jax
import jax.numpy as jnp
from jax.experimental import pallas as pl
from jax.experimental.pallas import tpu as pltpu


# ---------------- config (mirrors config.pla_* fields) ----------------
PLA_NUM_POINTS = 8
PLA_LEFT_BOUND = -3.0
PLA_RIGHT_BOUND = 3.0

TARGET_BLOCK_BYTES = 2 * 1024 * 1024   # ~2 MiB per block buffer
MIN_SPLIT_BYTES = 512 * 1024           # split single-block problems >= this into 2 (v7x 2 TCs)
LANE_CANDIDATES = (1024, 512, 256, 128)


# ---------------- parameter init (mirrors nn.Module.__init__) ----------------
def init_pla_params(num_points, left_bound, right_bound):
    # torch.linspace(left, right, num_points + 2)[1:-1]
    x_vals = jnp.linspace(left_bound, right_bound, num_points + 2, dtype=jnp.float32)[1:-1]
    # y_vals = GELU(x_vals)  (PyTorch nn.GELU default = exact erf-based GELU)
    y_vals = jax.nn.gelu(x_vals, approximate=False).astype(jnp.float32)
    return x_vals, y_vals


def _bf16_vpu_available():
    # Native bf16 VALU exists on v6e / v7x; keep f32 math on v5e and older.
    try:
        kind = jax.devices()[0].device_kind.lower()
    except Exception:
        return False
    return ("v6" in kind) or ("v7" in kind) or ("tpu7" in kind)


# ---------------- kernels ----------------
def pla_kernel_smem(bnd_ref, dlt_ref, y0_ref, x_ref, o_ref, *, num_points):
    # f32 compute path; knot params arrive as f32 scalars via scalar prefetch (SMEM).
    x = x_ref[...]
    if x.dtype != jnp.float32:
        x = x.astype(jnp.float32)

    # Hoist all SMEM scalar reads once per tile.
    bnd = [bnd_ref[i] for i in range(num_points + 1)]
    dlt = [dlt_ref[i] for i in range(num_points)]

    # relu-basis evaluation; y0 folded into segment 0 (no zeros materialization).
    acc = dlt[0] * jnp.maximum(x - bnd[0], 0.0) + y0_ref[0]
    for i in range(1, num_points):
        acc = acc + dlt[i] * jnp.maximum(x - bnd[i], 0.0)

    acc = jnp.where(x < bnd[0], 0.0, acc)        # zero below the left knot
    acc = jnp.where(x >= bnd[num_points], x, acc)  # identity beyond right_bound
    o_ref[...] = acc.astype(o_ref.dtype)


def pla_kernel_const(x_ref, o_ref, *, bnd, dlt, y0, compute_dtype):
    # bf16 fast path (v6e/v7x): knot params are compile-time splat constants,
    # all vector math stays in the input dtype (2x elements per vreg/op).
    x = x_ref[...].astype(compute_dtype)
    acc = dlt[0] * jnp.maximum(x - bnd[0], 0.0) + y0
    for i in range(1, len(dlt)):
        acc = acc + dlt[i] * jnp.maximum(x - bnd[i], 0.0)
    acc = jnp.where(x < bnd[0], 0.0, acc)
    acc = jnp.where(x >= bnd[-1], x, acc)
    o_ref[...] = acc.astype(o_ref.dtype)


# ---------------- tiling helpers ----------------
def _choose_lane_width(total):
    # Prefer the widest lane dim that divides total AND leaves >= 8 rows.
    for lw in LANE_CANDIDATES:
        if total % lw == 0 and total // lw >= 8:
            return lw
    for lw in LANE_CANDIDATES:
        if total % lw == 0:
            return lw
    return None  # needs the (rare) pad fallback


# ---------------- wrapper ----------------
def piecewise_learnable_activation(x, x_vals, y_vals, *,
                                   right_bound=PLA_RIGHT_BOUND,
                                   donate_input=False):
    orig_shape = x.shape
    orig_dtype = x.dtype
    itemsize = x.dtype.itemsize
    num_points = int(x_vals.shape[0])

    # ---- hoist all scalar math out of the kernel (runs once in XLA) ----
    xv = x_vals.astype(jnp.float32)
    yv = y_vals.astype(jnp.float32)
    rb = jnp.array([right_bound], dtype=jnp.float32)
    boundaries = jnp.concatenate([xv, rb])          # (P+1,)  b_0..b_P (b_P = right_bound)
    knot_y = jnp.concatenate([yv, rb])              # (P+1,)  f(b_i); f(right_bound)=right_bound
    slopes = (knot_y[1:] - knot_y[:-1]) / (boundaries[1:] - boundaries[:-1])  # (P,)
    deltas = jnp.concatenate([slopes[:1], slopes[1:] - slopes[:-1]])          # (P,)
    y0 = yv[:1]                                                               # (1,)

    # ---- choose compute path ----
    const_params = None
    if orig_dtype == jnp.bfloat16 and _bf16_vpu_available():
        try:  # concrete (eager) params -> bake as bf16-friendly splat constants
            const_params = (
                tuple(float(boundaries[i]) for i in range(num_points + 1)),
                tuple(float(deltas[i]) for i in range(num_points)),
                float(y0[0]),
            )
        except Exception:  # traced params (under jit) -> keep f32 SMEM path
            const_params = None
    compute_dtype = jnp.bfloat16 if const_params is not None else jnp.float32

    # ---- lane-dense 2D slab, no padding copy in the common case ----
    total = int(x.size)
    xf = x.reshape(-1)
    lane_width = _choose_lane_width(total)
    padded_total = total
    if lane_width is None:
        # Rare fallback (total not a multiple of 128): costs one extra HBM pass.
        lane_width = 128
        padded_total = -(-total // lane_width) * lane_width
        xf = jnp.pad(xf, (0, padded_total - total))
    rows = padded_total // lane_width
    x2d = xf.reshape(rows, lane_width)

    # ---- block sizing ----
    row_align = 16 if itemsize < 4 else 8
    target_elems = TARGET_BLOCK_BYTES // itemsize
    max_block_rows = max(row_align, (target_elems // lane_width) // row_align * row_align)
    if rows > max_block_rows:
        block_rows = max_block_rows
    elif rows >= 2 * row_align and rows * lane_width * itemsize >= MIN_SPLIT_BYTES:
        # Big enough to be worth >= 2 programs (both v7x TensorCores).
        half = (rows + 1) // 2
        block_rows = -(-half // row_align) * row_align
    else:
        block_rows = rows
    grid = pl.cdiv(rows, block_rows)   # trailing partial block handled by Pallas (no pad)

    donate = bool(donate_input) and padded_total == total

    common = dict(
        out_shape=jax.ShapeDtypeStruct((rows, lane_width), orig_dtype),
        compiler_params=pltpu.CompilerParams(dimension_semantics=("parallel",)),
        cost_estimate=pl.CostEstimate(
            flops=padded_total * (4 * num_points + 4),
            transcendentals=0,
            bytes_accessed=2 * padded_total * itemsize,
        ),
    )

    if const_params is not None:
        bnd_c, dlt_c, y0_c = const_params
        kernel = functools.partial(pla_kernel_const, bnd=bnd_c, dlt=dlt_c, y0=y0_c,
                                   compute_dtype=compute_dtype)
        out2d = pl.pallas_call(
            kernel,
            grid_spec=pltpu.PrefetchScalarGridSpec(
                num_scalar_prefetch=0,
                grid=(grid,),
                in_specs=[pl.BlockSpec((block_rows, lane_width), lambda i: (i, 0))],
                out_specs=pl.BlockSpec((block_rows, lane_width), lambda i: (i, 0)),
            ),
            input_output_aliases=({0: 0} if donate else {}),
            **common,
        )(x2d)
    else:
        kernel = functools.partial(pla_kernel_smem, num_points=num_points)
        out2d = pl.pallas_call(
            kernel,
            grid_spec=pltpu.PrefetchScalarGridSpec(
                num_scalar_prefetch=3,            # boundaries, deltas, y0 -> SMEM
                grid=(grid,),
                in_specs=[pl.BlockSpec((block_rows, lane_width), lambda i, b, d, y: (i, 0))],
                out_specs=pl.BlockSpec((block_rows, lane_width), lambda i, b, d, y: (i, 0)),
            ),
            # alias index counts the 3 scalar-prefetch operands -> x2d is operand 3
            input_output_aliases=({3: 0} if donate else {}),
            **common,
        )(boundaries, deltas, y0, x2d)

    out = out2d.reshape(-1)
    if padded_total != total:
        out = out[:total]
    return out.reshape(orig_shape)


# ---------------- pure-JAX reference (mirrors the torch forward) ----------------
def pla_reference(x, x_vals, y_vals, right_bound=PLA_RIGHT_BOUND):
    num_points = x_vals.shape[0]
    result = jnp.zeros_like(x)
    result = jnp.where(x < x_vals[0], 0.0, result)
    for i in range(num_points - 1):
        slope = (y_vals[i + 1] - y_vals[i]) / (x_vals[i + 1] - x_vals[i])
        intercept = y_vals[i] - slope * x_vals[i]
        segment = slope * x + intercept
        result = jnp.where((x >= x_vals[i]) & (x < x_vals[i + 1]), segment, result)
    slope = (right_bound - y_vals[-1]) / (right_bound - x_vals[-1])
    intercept = y_vals[-1] - slope * x_vals[-1]
    segment = slope * x + intercept
    result = jnp.where((x >= x_vals[-1]) & (x < right_bound), segment, result)
    result = jnp.where(x >= right_bound, x, result)
    return result


if __name__ == "__main__":
    key = jax.random.PRNGKey(0)
    k1, k2, k3 = jax.random.split(key, 3)
    x_vals, y_vals = init_pla_params(PLA_NUM_POINTS, PLA_LEFT_BOUND, PLA_RIGHT_BOUND)

    # Primary demo: small NCHW activation, f32, single block.
    x = jax.random.normal(k1, (2, 4, 16, 16), dtype=jnp.float32) * 2.5
    out = jax.block_until_ready(piecewise_learnable_activation(x, x_vals, y_vals))
    ref = pla_reference(x, x_vals, y_vals)
    assert out.shape == x.shape and out.dtype == x.dtype
    assert jnp.allclose(out, ref, atol=1e-5, rtol=1e-5), "f32 single-block mismatch"

    # Multi-block path: >=512 KiB gets split into 2 programs (both v7x TCs).
    xl = jax.random.normal(k2, (2, 16, 64, 64), dtype=jnp.float32) * 2.5
    outl = jax.block_until_ready(piecewise_learnable_activation(xl, x_vals, y_vals))
    assert jnp.allclose(outl, pla_reference(xl, x_vals, y_vals), atol=1e-5, rtol=1e-5), \
        "f32 multi-block mismatch"

    # Awkward size (total not a multiple of 128) -> rare pad fallback path.
    xo = jax.random.normal(k3, (3, 5, 24, 40), dtype=jnp.float32) * 2.5
    outo = jax.block_until_ready(piecewise_learnable_activation(xo, x_vals, y_vals))
    assert jnp.allclose(outo, pla_reference(xo, x_vals, y_vals), atol=1e-5, rtol=1e-5), \
        "f32 pad-fallback mismatch"

    # bf16 input: native bf16 VALU path on v6e/v7x, f32 compute elsewhere.
    # Loose tolerance: knot boundaries/accumulation quantize to bf16 on the fast path.
    xb = x.astype(jnp.bfloat16)
    outb = jax.block_until_ready(piecewise_learnable_activation(xb, x_vals, y_vals))
    refb = pla_reference(xb.astype(jnp.float32), x_vals, y_vals)
    assert outb.dtype == jnp.bfloat16
    assert float(jnp.max(jnp.abs(outb.astype(jnp.float32) - refb))) < 0.2, "bf16 mismatch"

    print("KERNEL_OK")
</pallas_src>

<mosaic_0001>
module attributes {stable_mosaic.version = 11 : i64} {
  func.func @pla_kernel_smem(%arg0: i32, %arg1: memref<9xf32, #tpu.memory_space<smem>>, %arg2: memref<8xf32, #tpu.memory_space<smem>>, %arg3: memref<1xf32, #tpu.memory_space<smem>>, %arg4: memref<8x256xf32, #tpu.memory_space<vmem>>, %arg5: memref<8x256xf32, #tpu.memory_space<vmem>>) attributes {dimension_semantics = [#tpu.dimension_semantics<parallel>], iteration_bounds = array<i64: 1>, scalar_prefetch = 3 : i64, scratch_operands = 0 : i64, tpu.core_type = #tpu.core_type<tc>, window_params = [{transform_indices = @transform_0, window_bounds = array<i64: 8, 256>}, {transform_indices = @transform_1, window_bounds = array<i64: 8, 256>}]} {
    %c0 = arith.constant 0 : index
    %c0_0 = arith.constant 0 : index
    %0 = vector.load %arg4[%c0, %c0_0] : memref<8x256xf32, #tpu.memory_space<vmem>>, vector<8x256xf32>
    %c0_1 = arith.constant 0 : index
    %1 = memref.load %arg1[%c0_1] : memref<9xf32, #tpu.memory_space<smem>>
    %c1 = arith.constant 1 : index
    %2 = memref.load %arg1[%c1] : memref<9xf32, #tpu.memory_space<smem>>
    %c2 = arith.constant 2 : index
    %3 = memref.load %arg1[%c2] : memref<9xf32, #tpu.memory_space<smem>>
    %c3 = arith.constant 3 : index
    %4 = memref.load %arg1[%c3] : memref<9xf32, #tpu.memory_space<smem>>
    %c4 = arith.constant 4 : index
    %5 = memref.load %arg1[%c4] : memref<9xf32, #tpu.memory_space<smem>>
    %c5 = arith.constant 5 : index
    %6 = memref.load %arg1[%c5] : memref<9xf32, #tpu.memory_space<smem>>
    %c6 = arith.constant 6 : index
    %7 = memref.load %arg1[%c6] : memref<9xf32, #tpu.memory_space<smem>>
    %c7 = arith.constant 7 : index
    %8 = memref.load %arg1[%c7] : memref<9xf32, #tpu.memory_space<smem>>
    %c8 = arith.constant 8 : index
    %9 = memref.load %arg1[%c8] : memref<9xf32, #tpu.memory_space<smem>>
    %c0_2 = arith.constant 0 : index
    %10 = memref.load %arg2[%c0_2] : memref<8xf32, #tpu.memory_space<smem>>
    %c1_3 = arith.constant 1 : index
    %11 = memref.load %arg2[%c1_3] : memref<8xf32, #tpu.memory_space<smem>>
    %c2_4 = arith.constant 2 : index
    %12 = memref.load %arg2[%c2_4] : memref<8xf32, #tpu.memory_space<smem>>
    %c3_5 = arith.constant 3 : index
    %13 = memref.load %arg2[%c3_5] : memref<8xf32, #tpu.memory_space<smem>>
    %c4_6 = arith.constant 4 : index
    %14 = memref.load %arg2[%c4_6] : memref<8xf32, #tpu.memory_space<smem>>
    %c5_7 = arith.constant 5 : index
    %15 = memref.load %arg2[%c5_7] : memref<8xf32, #tpu.memory_space<smem>>
    %c6_8 = arith.constant 6 : index
    %16 = memref.load %arg2[%c6_8] : memref<8xf32, #tpu.memory_space<smem>>
    %c7_9 = arith.constant 7 : index
    %17 = memref.load %arg2[%c7_9] : memref<8xf32, #tpu.memory_space<smem>>
    %18 = vector.broadcast %1 : f32 to vector<8x256xf32>
    %19 = arith.subf %0, %18 : vector<8x256xf32>
    %cst = arith.constant 0.000000e+00 : f32
    %20 = vector.broadcast %cst : f32 to vector<8x256xf32>
    %21 = arith.maximumf %19, %20 : vector<8x256xf32>
    %22 = vector.broadcast %10 : f32 to vector<8x256xf32>
    %23 = arith.mulf %22, %21 : vector<8x256xf32>
    %c0_10 = arith.constant 0 : index
    %24 = memref.load %arg3[%c0_10] : memref<1xf32, #tpu.memory_space<smem>>
    %25 = vector.broadcast %24 : f32 to vector<8x256xf32>
    %26 = arith.addf %23, %25 : vector<8x256xf32>
    %27 = vector.broadcast %2 : f32 to vector<8x256xf32>
    %28 = arith.subf %0, %27 : vector<8x256xf32>
    %cst_11 = arith.constant 0.000000e+00 : f32
    %29 = vector.broadcast %cst_11 : f32 to vector<8x256xf32>
    %30 = arith.maximumf %28, %29 : vector<8x256xf32>
    %31 = vector.broadcast %11 : f32 to vector<8x256xf32>
    %32 = arith.mulf %31, %30 : vector<8x256xf32>
    %33 = arith.addf %26, %32 : vector<8x256xf32>
    %34 = vector.broadcast %3 : f32 to vector<8x256xf32>
    %35 = arith.subf %0, %34 : vector<8x256xf32>
    %cst_12 = arith.constant 0.000000e+00 : f32
    %36 = vector.broadcast %cst_12 : f32 to vector<8x256xf32>
    %37 = arith.maximumf %35, %36 : vector<8x256xf32>
    %38 = vector.broadcast %12 : f32 to vector<8x256xf32>
    %39 = arith.mulf %38, %37 : vector<8x256xf32>
    %40 = arith.addf %33, %39 : vector<8x256xf32>
    %41 = vector.broadcast %4 : f32 to vector<8x256xf32>
    %42 = arith.subf %0, %41 : vector<8x256xf32>
    %cst_13 = arith.constant 0.000000e+00 : f32
    %43 = vector.broadcast %cst_13 : f32 to vector<8x256xf32>
    %44 = arith.maximumf %42, %43 : vector<8x256xf32>
    %45 = vector.broadcast %13 : f32 to vector<8x256xf32>
    %46 = arith.mulf %45, %44 : vector<8x256xf32>
    %47 = arith.addf %40, %46 : vector<8x256xf32>
    %48 = vector.broadcast %5 : f32 to vector<8x256xf32>
    %49 = arith.subf %0, %48 : vector<8x256xf32>
    %cst_14 = arith.constant 0.000000e+00 : f32
    %50 = vector.broadcast %cst_14 : f32 to vector<8x256xf32>
    %51 = arith.maximumf %49, %50 : vector<8x256xf32>
    %52 = vector.broadcast %14 : f32 to vector<8x256xf32>
    %53 = arith.mulf %52, %51 : vector<8x256xf32>
    %54 = arith.addf %47, %53 : vector<8x256xf32>
    %55 = vector.broadcast %6 : f32 to vector<8x256xf32>
    %56 = arith.subf %0, %55 : vector<8x256xf32>
    %cst_15 = arith.constant 0.000000e+00 : f32
    %57 = vector.broadcast %cst_15 : f32 to vector<8x256xf32>
    %58 = arith.maximumf %56, %57 : vector<8x256xf32>
    %59 = vector.broadcast %15 : f32 to vector<8x256xf32>
    %60 = arith.mulf %59, %58 : vector<8x256xf32>
    %61 = arith.addf %54, %60 : vector<8x256xf32>
    %62 = vector.broadcast %7 : f32 to vector<8x256xf32>
    %63 = arith.subf %0, %62 : vector<8x256xf32>
    %cst_16 = arith.constant 0.000000e+00 : f32
    %64 = vector.broadcast %cst_16 : f32 to vector<8x256xf32>
    %65 = arith.maximumf %63, %64 : vector<8x256xf32>
    %66 = vector.broadcast %16 : f32 to vector<8x256xf32>
    %67 = arith.mulf %66, %65 : vector<8x256xf32>
    %68 = arith.addf %61, %67 : vector<8x256xf32>
    %69 = vector.broadcast %8 : f32 to vector<8x256xf32>
    %70 = arith.subf %0, %69 : vector<8x256xf32>
    %cst_17 = arith.constant 0.000000e+00 : f32
    %71 = vector.broadcast %cst_17 : f32 to vector<8x256xf32>
    %72 = arith.maximumf %70, %71 : vector<8x256xf32>
    %73 = vector.broadcast %17 : f32 to vector<8x256xf32>
    %74 = arith.mulf %73, %72 : vector<8x256xf32>
    %75 = arith.addf %68, %74 : vector<8x256xf32>
    %76 = vector.broadcast %1 : f32 to vector<8x256xf32>
    %77 = arith.cmpf olt, %0, %76 : vector<8x256xf32>
    %cst_18 = arith.constant 0.000000e+00 : f32
    %78 = vector.broadcast %cst_18 : f32 to vector<8x256xf32>
    %79 = arith.select %77, %78, %75 : vector<8x256xi1>, vector<8x256xf32>
    %80 = vector.broadcast %9 : f32 to vector<8x256xf32>
    %81 = arith.cmpf oge, %0, %80 : vector<8x256xf32>
    %82 = arith.select %81, %0, %79 : vector<8x256xi1>, vector<8x256xf32>
    %c0_19 = arith.constant 0 : index
    %c0_20 = arith.constant 0 : index
    %83 = vector.load %arg5[%c0_19, %c0_20] : memref<8x256xf32, #tpu.memory_space<vmem>>, vector<8x256xf32>
    tpu.vector_store %arg5[%c0_19, %c0_20], %82 {strides = array<i32>} : memref<8x256xf32, #tpu.memory_space<vmem>>, vector<8x256xf32>,
    return
  }
  func.func @transform_0(%arg0: i32, %arg1: memref<9xf32, #tpu.memory_space<smem>>, %arg2: memref<8xf32, #tpu.memory_space<smem>>, %arg3: memref<1xf32, #tpu.memory_space<smem>>) -> (i32, i32) {
    %c0_i32 = arith.constant 0 : i32
    %c0_i32_0 = arith.constant 0 : i32
    return %arg0, %c0_i32 : i32, i32
  }
  func.func @transform_1(%arg0: i32, %arg1: memref<9xf32, #tpu.memory_space<smem>>, %arg2: memref<8xf32, #tpu.memory_space<smem>>, %arg3: memref<1xf32, #tpu.memory_space<smem>>) -> (i32, i32) {
    %c0_i32 = arith.constant 0 : i32
    %c0_i32_0 = arith.constant 0 : i32
    return %arg0, %c0_i32 : i32, i32
  }
}

</mosaic_0001>

<bundles_post_ra>
// kernel: tpu_custom_call.1
= control target key start
LH: loop header
LB: loop body
LE: loop exit
PB: predicated region body
PF: predicated region fallthrough
CT: control target
= control target key end

     0   :  { %s397_s0 = inlined_call_operand.vmem [shape: f32[9], index: 0, kind: input, shape index: {}]   ;;  %s398_s2 = inlined_call_operand.<no memory space> [shape: f32[1], index: 2, kind: input, shape index: {}]   ;;  %s399_s3 = inlined_call_operand.hbm [shape: f32[8,256], index: 3, kind: input, shape index: {}]   ;;  %s400_s4 = inlined_call_operand.hbm [shape: f32[8,256], index: 4, kind: output, shape index: {}]   ;;  %s401_s1 = inlined_call_operand.vmem [shape: f32[8], index: 1, kind: input, shape index: {}]  }
   0x1   :  { %s9_s17 = sshll.u32 %s397_s0, 4  ;;  %s13_s20 = sshll.u32 %s401_s1, 4  ;;  %s10_s17 = int_to_ptr.vmem [resolvable:$true] %s9_s17  ;;  %s14_s20 = int_to_ptr.vmem [resolvable:$true] %s13_s20 }
   0x2   :  { %s181_s21 = scalar_lea.vmem %s10_s17, 16  ;;  %p186_p1 = scmp.lt.s32.totalorder %s10_s17, %s10_s17 }
   0x3   :  { %p182_p0 = scmp.ne.s32.totalorder %s10_s17, %s181_s21  ;;  %p187_p2 = scmp.lt.s32.totalorder %s181_s21, %s181_s21 }
   0x5   :  { %p188_p3 = por %p187_p2, %p186_p1 }
   0x7   :  { %p189_p4 = pnand %p188_p3, %p182_p0 }
   0x9   :  { %192 = shalt.err (!%p189_p4)  }
   0xa   :  { %s255_s22 = smov [#allocation3]   ;;  %s193_s23 = scalar_lea.vmem %s14_s20, 16 }
   0xb   :  { %12 = dma.vmem_to_smem %s10_s17, 16, %s255_s22, [#allocation2] }
   0xc   :  { %p194_p5 = scmp.ne.s32.totalorder %s14_s20, %s193_s23  ;;  %p198_p6 = scmp.lt.s32.totalorder %s14_s20, %s14_s20 }
   0xd   :  { %p199_p7 = scmp.lt.s32.totalorder %s193_s23, %s193_s23 }
   0xf   :  { %p200_p8 = por %p199_p7, %p198_p6 }
  0x11   :  { %p201_p9 = pnand %p200_p8, %p194_p5 }
  0x13   :  { %204 = shalt.err (!%p201_p9)  }
  0x14   :  { %s256_s0 = smov [#allocation4]  }
  0x15   :  { %16 = dma.vmem_to_smem %s14_s20, 16, %s256_s0, [#allocation2] }
  0x16   :  { %249 = dma.done.wait [#allocation2], 32 }
  0x17   :  { %250 = vsyncadd [#allocation2], 4294967264 }
  0x18   :  { %19 = sfence }
  0x19   :  { %20 = vsyncpa [#allocation7], 0 }
  0x1a   :  { %21 = vsyncpa [#allocation8], 0  ;;  %s257_s1 = smov [#allocation6]   ;;  %s205_s27 = scalar_lea.hbm %s399_s3, 256 }
  0x1b   :  { %s28_s24 = sshll.u32 %s257_s1, 4  ;;  %p206_p10 = scmp.ne.s32.totalorder %s399_s3, %s205_s27  ;;  %s29_s24 = int_to_ptr.vmem [resolvable:$true] %s28_s24 }
  0x1c   :  { %p209_p11 = scmp.lt.u32.totalorder %s205_s27, %s399_s3 }
  0x1e   :  { %p211_p12 = pnand %p209_p11, %p206_p10 }
  0x20   :  { %214 = shalt.err (!%p211_p12)
}
  0x21   :  { %s215_s6 = scalar_lea.vmem %s29_s24, 256  ;;  %p220_p0 = scmp.lt.s32.totalorder %s29_s24, %s29_s24 }
  0x22   :  { %p216_p13 = scmp.ne.s32.totalorder %s29_s24, %s215_s6  ;;  %p221_p1 = scmp.lt.s32.totalorder %s215_s6, %s215_s6 }
  0x24   :  { %p222_p2 = por %p221_p1, %p220_p0 }
  0x26   :  { %p223_p3 = pnand %p222_p2, %p216_p13 }
  0x28   :  { %226 = shalt.err (!%p223_p3)
}
  0x29   :  { %31 = dma.hbm_to_vmem [thread:$0]  %s399_s3, 256, %s29_s24, [#allocation7]  }
  0x2a   :  { %251 = dma.done.wait [#allocation7], 256  }
  0x2b   :  { %252 = vsyncadd [#allocation7], 4294967040  ;;  %s37_s9 = sld [smem:[#allocation3]]  ;;  %s302_s10 = sld [smem:[#allocation3 + $0x1]]  ;;  %v320_v0 = vld [vmem:[#allocation6] sm:$0xff]  ;;  %v322_v1 = vld [vmem:[#allocation6 + $0x8] sm:$0xff]  ;;  %v63_v3 = vstv %s398_s2 }
  0x2c   :  { %s304_s11 = sld [smem:[#allocation3 + $0x2]]  ;;  %s306_s12 = sld [smem:[#allocation3 + $0x3]] }
  0x2d   :  { %s308_s13 = sld [smem:[#allocation3 + $0x4]]  ;;  %s310_s14 = sld [smem:[#allocation3 + $0x5]] }
  0x2e   :  { %s312_s15 = sld [smem:[#allocation3 + $0x6]]  ;;  %s314_s16 = sld [smem:[#allocation4]] }
  0x2f   :  { %s316_s3 = sld [smem:[#allocation4 + $0x1]]  ;;  %s318_s17 = sld [smem:[#allocation4 + $0x2]] }
  0x30   :  { %s324_s18 = sld [smem:[#allocation4 + $0x3]]  ;;  %s326_s19 = sld [smem:[#allocation4 + $0x4]] }
  0x31   :  { %v328_v2 = vstv %s37_s9  ;;  %v66_v4 = vstv %s302_s10  ;;  %s334_s22 = sld [smem:[#allocation4 + $0x5]]  ;;  %s342_s23 = sld [smem:[#allocation3 + $0x7]] }
  0x32   :  { %v55_v5 = vsub.f32 %v320_v0, %v328_v2  ;;  %v56_v6 = vsub.f32 %v322_v1, %v328_v2  ;;  %v67_v7 = vsub.f32 %v320_v0, %v66_v4  ;;  %v76_v8 = vstv %s304_s11  ;;  %s348_s2 = sld [smem:[#allocation4 + $0x6]]  ;;  %s354_s0 = sld [smem:[#allocation4 + $0x7]] }
  0x33   :  { %v77_v9 = vsub.f32 %v320_v0, %v76_v8  ;;  %v86_v10 = vstv %s306_s12  ;;  %v96_v11 = vstv %s308_s13  ;;  %v106_v12 = vstv %s310_s14  ;;  %s361_s1 = sld [smem:[#allocation3 + $0x8]]  ;;  %s258_s24 = smov [#allocation9]  }
  0x34   :  { %v57_v13 = vmax.f32 %v55_v5, 0.0  ;;  %v58_v14 = vmax.f32 %v56_v6, 0.0  ;;  %v69_v15 = vmax.f32 %v67_v7, 0.0  ;;  %v87_v16 = vsub.f32 %v320_v0, %v86_v10  ;;  %s153_s25 = sshll.u32 %s258_s24, 4  ;;  %s154_s25 = int_to_ptr.vmem [resolvable:$true] %s153_s25 }
  0x35   :  { %v59_v17 = vstv %s314_s16  ;;  %v79_v18 = vmax.f32 %v77_v9, 0.0  ;;  %v97_v19 = vsub.f32 %v320_v0, %v96_v11  ;;  %v107_v20 = vsub.f32 %v320_v0, %v106_v12  ;;  %s227_s26 = scalar_lea.vmem %s154_s25, 256  ;;  %p232_p5 = scmp.lt.s32.totalorder %s154_s25, %s154_s25 }
  0x36   :  { %v60_v21 = vmul.f32 %v59_v17, %v57_v13  ;;  %v71_v22 = vstv %s316_s3  ;;  %v81_v23 = vstv %s318_s17  ;;  %v61_v24 = vmul.f32 %v59_v17, %v58_v14  ;;  %p228_p4 = scmp.ne.s32.totalorder %s154_s25, %s227_s26  ;;  %p233_p6 = scmp.lt.s32.totalorder %s227_s26, %s227_s26 }
  0x37   :  { %v72_v25 = vmul.f32 %v71_v22, %v69_v15  ;;  %v89_v26 = vmax.f32 %v87_v16, 0.0  ;;  %v91_v27 = vstv %s324_s18  ;;  %v82_v29 = vmul.f32 %v81_v23, %v79_v18 }
  0x38   :  { %v64_v28 = vadd.f32 %v63_v3, %v60_v21  ;;  %v99_v30 = vmax.f32 %v97_v19, 0.0  ;;  %v101_v31 = vstv %s326_s19  ;;  %v109_v32 = vmax.f32 %v107_v20, 0.0  ;;  %p234_p7 = por %p233_p6, %p232_p5 }
  0x39   :  { %v116_v33 = vstv %s312_s15  ;;  %v92_v35 = vmul.f32 %v91_v27, %v89_v26  ;;  %v111_v36 = vstv %s334_s22  ;;  %v65_v38 = vadd.f32 %v63_v3, %v61_v24 }
  0x3a   :  { %v74_v34 = vadd.f32 %v72_v25, %v64_v28  ;;  %v117_v37 = vsub.f32 %v320_v0, %v116_v33  ;;  %v102_v39 = vmul.f32 %v101_v31, %v99_v30  ;;  %v126_v40 = vstv %s342_s23  ;;  %p235_p8 = pnand %p234_p7, %p228_p4 }
  0x3b   :  { %v121_v43 = vstv %s348_s2  ;;  %v127_v44 = vsub.f32 %v320_v0, %v126_v40  ;;  %v112_v45 = vmul.f32 %v111_v36, %v109_v32  ;;  %v68_v46 = vsub.f32 %v322_v1, %v66_v4 }
  0x3c   :  { %v84_v41 = vadd.f32 %v82_v29, %v74_v34  ;;  %v119_v42 = vmax.f32 %v117_v37, 0.0  ;;  %v78_v47 = vsub.f32 %v322_v1, %v76_v8  ;;  %v88_v48 = vsub.f32 %v322_v1, %v86_v10 }
  0x3d   :  { %v129_v50 = vmax.f32 %v127_v44, 0.0  ;;  %v131_v51 = vstv %s354_s0  ;;  %v98_v52 = vsub.f32 %v322_v1, %v96_v11  ;;  %v70_v53 = vmax.f32 %v68_v46, 0.0 }
  0x3e   :  { %v94_v49 = vadd.f32 %v92_v35, %v84_v41  ;;  %v80_v54 = vmax.f32 %v78_v47, 0.0  ;;  %v90_v55 = vmax.f32 %v88_v48, 0.0  ;;  %v108_v56 = vsub.f32 %v322_v1, %v106_v12 }
  0x3f   :  { %v122_v58 = vmul.f32 %v121_v43, %v119_v42  ;;  %v73_v59 = vmul.f32 %v71_v22, %v70_v53  ;;  %v100_v61 = vmax.f32 %v98_v52, 0.0  ;;  %v118_v62 = vsub.f32 %v322_v1, %v116_v33 }
  0x40   :  { %v104_v57 = vadd.f32 %v102_v39, %v94_v49  ;;  %v83_v60 = vmul.f32 %v81_v23, %v80_v54  ;;  %v132_v3 = vmul.f32 %v131_v51, %v129_v50  ;;  %v140_v4 = vstv %s361_s1 }
  0x41   :  { %v75_v5 = vadd.f32 %v73_v59, %v65_v38  ;;  %v93_v6 = vmul.f32 %v91_v27, %v90_v55  ;;  %v110_v7 = vmax.f32 %v108_v56, 0.0  ;;  %v128_v8 = vsub.f32 %v322_v1, %v126_v40 }
  0x42   :  { %v114_v63 = vadd.f32 %v112_v45, %v104_v57  ;;  %vm136_vm0 = vcmp.lt.f32.partialorder %v320_v0, %v328_v2  ;;  %v103_v11 = vmul.f32 %v101_v31, %v100_v61  ;;  %v120_v12 = vmax.f32 %v118_v62, 0.0 }
  0x43   :  { %v85_v10 = vadd.f32 %v83_v60, %v75_v5  ;;  %vm141_vm1 = vcmp.ge.f32.partialorder %v320_v0, %v140_v4  ;;  %v113_v15 = vmul.f32 %v111_v36, %v110_v7  ;;  %v130_v16 = vmax.f32 %v128_v8, 0.0 }
  0x44   :  { %v124_v9 = vadd.f32 %v122_v58, %v114_v63  ;;  %v123_v20 = vmul.f32 %v121_v43, %v120_v12  ;;  %vm137_vm2 = vcmp.lt.f32.partialorder %v322_v1, %v328_v2  ;;  %vm142_vm3 = vcmp.ge.f32.partialorder %v322_v1, %v140_v4 }
  0x45   :  { %v95_v14 = vadd.f32 %v93_v6, %v85_v10  ;;  %v133_v22 = vmul.f32 %v131_v51, %v130_v16 }
  0x46   :  { %v134_v13 = vadd.f32 %v132_v3, %v124_v9 }
  0x47   :  { %v105_v19 = vadd.f32 %v103_v11, %v95_v14 }
  0x48   :  { %v138_v17 = vsel %vm136_vm0, 0.0, %v134_v13 }
  0x49   :  { %v143_v18 = vsel %vm141_vm1, %v320_v0, %v138_v17  ;;  %v115_v21 = vadd.f32 %v113_v15, %v105_v19 }
  0x4a   :  { %145 = vst [vmem:[#allocation9] sm:$0xff] %v143_v18 }
  0x4b   :  { %v125_v23 = vadd.f32 %v123_v20, %v115_v21 }
  0x4d   :  { %v135_v24 = vadd.f32 %v133_v22, %v125_v23 }
  0x4f   :  { %v139_v25 = vsel %vm137_vm2, 0.0, %v135_v24 }
  0x50   :  { %v144_v26 = vsel %vm142_vm3, %v322_v1, %v139_v25 }
  0x51   :  { %146 = vst [vmem:[#allocation9 + $0x8] sm:$0xff] %v144_v26 }
  0x52   :  { %238 = shalt.err (!%p235_p8)
}
  0x53   :  { %s239_s29 = scalar_lea.hbm %s400_s4, 256 }
  0x54   :  { %p240_p9 = scmp.ne.s32.totalorder %s400_s4, %s239_s29  ;;  %p243_p10 = scmp.lt.u32.totalorder %s239_s29, %s400_s4 }
  0x56   :  { %p245_p11 = pnand %p243_p10, %p240_p9 }
  0x58   :  { %248 = shalt.err (!%p245_p11)
}
  0x59   :  { %156 = dma.vmem_to_hbm [thread:$0]  %s154_s25, 256, %s400_s4, [#allocation8]  }
  0x5a   :  { %253 = dma.done.wait [#allocation8], 256  }
  0x5b   :  { %254 = vsyncadd [#allocation8], 4294967040 }
  0x5c   :  { %160 = vsyncpa [#allocation7], 1 }
  0x5d   :  { %161 = vsyncpa [#allocation8], 1 }

</bundles_post_ra>
